<compile_context>
chip_gen: v7x
topology: tpu7x:2x2x1
jax: 0.10.0
libtpu: 0.0.40
codegen_flags: <defaults>
</compile_context>

<pallas_src>
import math
from functools import partial

import jax
import jax.numpy as jnp
from jax import lax
from jax.experimental import pallas as pl
from jax.experimental.pallas import tpu as pltpu


def _embedding_kernel(tok_ref, table_ref, out_ref, *, scale, v_chunk):
    """One grid step: gather `row_tile` embedding rows via one-hot MXU matmul.

    tok_ref   : VMEM int32 (row_tile, 1)   -- token ids for this tile
    table_ref : VMEM (vocab, model_dim)    -- whole table, resident, single-buffered
    out_ref   : VMEM (row_tile, model_dim) -- lane-dense output tile
    """
    row_tile = out_ref.shape[0]
    vocab = table_ref.shape[0]
    tok = tok_ref[...]                                    # (row_tile, 1) int32

    acc = jnp.zeros(out_ref.shape, jnp.float32)
    # Static Python loop over vocab chunks (single chunk for small/medium vocab)
    # keeps the one-hot temporary bounded for larger vocabularies.
    for v0 in range(0, vocab, v_chunk):
        vc = min(v_chunk, vocab - v0)
        ids = lax.broadcasted_iota(jnp.int32, (row_tile, vc), 1) + v0
        one_hot = (ids == tok).astype(table_ref.dtype)    # exact 0/1 selection matrix
        acc = acc + jnp.dot(
            one_hot,
            table_ref[v0:v0 + vc, :],                     # static slice of resident table
            preferred_element_type=jnp.float32,
            precision=lax.Precision.HIGHEST,              # fp32 contract precision
        )
    # Fused scale on the f32 accumulator, then one dense store of the tile.
    out_ref[...] = (acc * scale).astype(out_ref.dtype)


def embedding_forward(tokens, table, *, row_tile=None, v_chunk=1024):
    """tokens: (B, S) int, table: (vocab, model_dim).
    Returns (B, S, model_dim) = table[tokens] * sqrt(model_dim), in table's dtype."""
    tokens = jnp.asarray(tokens, jnp.int32)
    table = jnp.asarray(table)            # keep native dtype (no f32 upcast)
    B, S = tokens.shape
    V, D = table.shape
    scale = math.sqrt(D)

    # Pad vocab rows to a sublane multiple so the matmul contraction dim is aligned.
    if V % 8 != 0:
        table = jnp.pad(table, ((0, 8 - V % 8), (0, 0)))
    Vp = table.shape[0]

    rows = B * S
    if row_tile is None:
        cap = 1024                        # ~85% of HBM roofline at >=512-row tiles
        r8 = ((rows + 7) // 8) * 8
        if r8 <= cap:
            row_tile = r8                 # single tile, minimal/no padding
        else:
            row_tile = cap
            for t in range(cap, 7, -8):   # prefer a divisor: no padding, no tail copy
                if rows % t == 0:
                    row_tile = t
                    break
    num_tiles = pl.cdiv(rows, row_tile)
    rows_padded = num_tiles * row_tile

    tokens_flat = tokens.reshape(rows)
    if rows_padded != rows:
        # Pad with token 0 (valid index); padded rows are dropped below.
        tokens_flat = jnp.pad(tokens_flat, (0, rows_padded - rows))
    tokens_2d = tokens_flat.reshape(rows_padded, 1)

    vc = min(v_chunk, Vp)

    # Explicit VMEM budget: single-buffered table + double-buffered output tile
    # + token block + one-hot/accumulator temporaries + headroom.
    itemsize = table.dtype.itemsize
    vmem_need = (
        Vp * D * itemsize                 # table (single copy: untiled VMEM operand)
        + 2 * row_tile * D * itemsize     # double-buffered output tile
        + 2 * row_tile * 4                # token id block
        + row_tile * vc * 4               # one-hot temporary
        + row_tile * D * 4                # f32 accumulator
        + (8 << 20)                       # headroom for compiler scratch
    )
    vmem_limit = int(min(127 << 20, max(vmem_need, 32 << 20)))

    kernel = partial(_embedding_kernel, scale=scale, v_chunk=vc)

    out_flat = pl.pallas_call(
        kernel,
        out_shape=jax.ShapeDtypeStruct((rows_padded, D), table.dtype),
        grid=(num_tiles,),
        in_specs=[
            # Per-tile token ids (bounded footprint, scales to any B*S).
            pl.BlockSpec((row_tile, 1), lambda i: (i, 0)),
            # Whole embedding table resident in VMEM, single-buffered, DMA'd once.
            pl.BlockSpec(memory_space=pltpu.MemorySpace.VMEM),
        ],
        out_specs=pl.BlockSpec((row_tile, D), lambda i: (i, 0)),
        compiler_params=pltpu.CompilerParams(
            dimension_semantics=("parallel",),     # shard row tiles across TCs (v7x)
            vmem_limit_bytes=vmem_limit,
        ),
    )(tokens_2d, table)

    out = out_flat if rows_padded == rows else out_flat[:rows]
    return out.reshape(B, S, D)


def _reference(tokens, table):
    """Pure-JAX reference mirroring the PyTorch forward."""
    return table[tokens] * math.sqrt(table.shape[1])


if __name__ == "__main__":
    # Small deterministic shapes consistent with the module's forward.
    batch, seq_len = 2, 8
    vocab_size, model_dim = 256, 128      # model_dim = 128 -> lane-dense output stores

    key0 = jax.random.PRNGKey(0)
    k_tab, k_tok = jax.random.split(key0)

    table = jax.random.normal(k_tab, (vocab_size, model_dim), jnp.float32)
    tokens = jax.random.randint(k_tok, (batch, seq_len), 0, vocab_size, dtype=jnp.int32)

    out = embedding_forward(tokens, table)
    out = jax.block_until_ready(out)

    ref = _reference(tokens, table)
    assert out.shape == (batch, seq_len, model_dim), out.shape
    assert jnp.allclose(out, ref, atol=1e-5, rtol=1e-5), float(jnp.max(jnp.abs(out - ref)))

    print("KERNEL_OK")
</pallas_src>

<mosaic_0001>
module attributes {stable_mosaic.version = 11 : i64} {
  func.func @_embedding_kernel(%arg0: i32, %arg1: memref<16x1xi32, #tpu.memory_space<vmem>>, %arg2: memref<256x128xf32, #tpu.memory_space<vmem>>, %arg3: memref<16x128xf32, #tpu.memory_space<vmem>>) attributes {dimension_semantics = [#tpu.dimension_semantics<parallel>], iteration_bounds = array<i64: 1>, scalar_prefetch = 0 : i64, scratch_operands = 0 : i64, tpu.core_type = #tpu.core_type<tc>, window_params = [{transform_indices = @transform_0, window_bounds = array<i64: 16, 1>}, {pipeline_mode = #tpu.pipeline_mode<synchronous>, transform_indices = @transform_1, window_bounds = array<i64: 256, 128>}, {transform_indices = @transform_2, window_bounds = array<i64: 16, 128>}]} {
    %c0 = arith.constant 0 : index
    %c0_0 = arith.constant 0 : index
    %0 = vector.load %arg1[%c0, %c0_0] : memref<16x1xi32, #tpu.memory_space<vmem>>, vector<16x1xi32>
    %cst = arith.constant 0.000000e+00 : f32
    %1 = vector.broadcast %cst : f32 to vector<16x128xf32>
    %2 = tpu.iota {dimensions = array<i32: 1>} : vector<16x256xi32>
    %c0_i32 = arith.constant 0 : i32
    %3 = vector.broadcast %c0_i32 : i32 to vector<16x256xi32>
    %4 = arith.addi %2, %3 : vector<16x256xi32>
    %5 = vector.broadcast %0 : vector<16x1xi32> to vector<16x256xi32>
    %6 = arith.cmpi eq, %4, %5 : vector<16x256xi32>
    %7 = arith.extui %6 : vector<16x256xi1> to vector<16x256xi32>
    %8 = arith.sitofp %7 : vector<16x256xi32> to vector<16x256xf32>
    %c0_1 = arith.constant 0 : index
    %c0_2 = arith.constant 0 : index
    %9 = vector.load %arg2[%c0_1, %c0_2] : memref<256x128xf32, #tpu.memory_space<vmem>>, vector<256x128xf32>
    %cst_3 = arith.constant dense<0.000000e+00> : vector<16x128xf32>
    %10 = tpu.matmul %8, %9, %cst_3 {dimension_numbers = #tpu.dot_dimension_numbers<[1], [0], [0], [1], [0, 0, 1, 1], [], []>, precision = #tpu.contract_precision<fp32>} : vector<16x256xf32>, vector<256x128xf32>, vector<16x128xf32> -> vector<16x128xf32>
    %11 = arith.addf %1, %10 : vector<16x128xf32>
    %cst_4 = arith.constant 11.3137083 : f32
    %12 = vector.broadcast %cst_4 : f32 to vector<16x128xf32>
    %13 = arith.mulf %11, %12 : vector<16x128xf32>
    %c0_5 = arith.constant 0 : index
    %c0_6 = arith.constant 0 : index
    %14 = vector.load %arg3[%c0_5, %c0_6] : memref<16x128xf32, #tpu.memory_space<vmem>>, vector<16x128xf32>
    tpu.vector_store %arg3[%c0_5, %c0_6], %13 {strides = array<i32>} : memref<16x128xf32, #tpu.memory_space<vmem>>, vector<16x128xf32>,
    return
  }
  func.func @transform_0(%arg0: i32) -> (i32, i32) {
    %c0_i32 = arith.constant 0 : i32
    %c0_i32_0 = arith.constant 0 : i32
    return %arg0, %c0_i32 : i32, i32
  }
  func.func @transform_1(%arg0: i32) -> (i32, i32) {
    %c0_i32 = arith.constant 0 : i32
    %c0_i32_0 = arith.constant 0 : i32
    %c0_i32_1 = arith.constant 0 : i32
    return %c0_i32, %c0_i32_0 : i32, i32
  }
  func.func @transform_2(%arg0: i32) -> (i32, i32) {
    %c0_i32 = arith.constant 0 : i32
    %c0_i32_0 = arith.constant 0 : i32
    return %arg0, %c0_i32 : i32, i32
  }
}

</mosaic_0001>

<bundles_post_ra>
// kernel: tpu_custom_call.1
= control target key start
LH: loop header
LB: loop body
LE: loop exit
PB: predicated region body
PF: predicated region fallthrough
CT: control target
= control target key end

     0   :  { %7 = vsyncpa [#allocation3], 0  ;;  %s2293_s0 = inlined_call_operand.vmem [shape: s32[16,1], index: 0, kind: input, shape index: {}]   ;;  %s2294_s1 = inlined_call_operand.hbm [shape: f32[256,128], index: 1, kind: input, shape index: {}]   ;;  %s2295_s2 = inlined_call_operand.hbm [shape: f32[16,128], index: 2, kind: output, shape index: {}]  }
   0x1   :  { %8 = vsyncpa [#allocation4], 0  ;;  %s1512_s9 = smov [#allocation2]   ;;  %s1464_s13 = scalar_lea.hbm %s2294_s1, 4096 }
   0x2   :  { %s16_s10 = sshll.u32 %s1512_s9, 4  ;;  %p1465_p0 = scmp.ne.s32.totalorder %s2294_s1, %s1464_s13  ;;  %s17_s10 = int_to_ptr.vmem [resolvable:$true] %s16_s10 }
   0x3   :  { %p1468_p1 = scmp.lt.u32.totalorder %s1464_s13, %s2294_s1 }
   0x5   :  { %p1470_p2 = pnand %p1468_p1, %p1465_p0 }
   0x7   :  { %1473 = shalt.err (!%p1470_p2)
}
   0x8   :  { %s1474_s18 = scalar_lea.vmem %s17_s10, 4096  ;;  %p1479_p4 = scmp.lt.s32.totalorder %s17_s10, %s17_s10 }
   0x9   :  { %p1475_p3 = scmp.ne.s32.totalorder %s17_s10, %s1474_s18  ;;  %p1480_p5 = scmp.lt.s32.totalorder %s1474_s18, %s1474_s18 }
   0xb   :  { %p1481_p6 = por %p1480_p5, %p1479_p4 }
   0xd   :  { %p1482_p7 = pnand %p1481_p6, %p1475_p3 }
   0xf   :  { %1485 = shalt.err (!%p1482_p7)
}
  0x10   :  { %s1513_s19 = smov 128   ;;  %s1514_s20 = smov 8  }
  0x11   :  { %22 = dma.hbm_to_vmem [thread:$0]  %s2294_s1, 4096, %s17_s10, [#allocation3], %s1513_s19, %s1513_s19, %s1514_s20  }
  0x12   :  { %1508 = dma.done.wait [#allocation3], 4096  }
  0x13   :  { %1509 = vsyncadd [#allocation3], 4294963200  ;;  %v1515_v0 = vmov 0   ;;  %v26_v1 = vld [vmem:[%s2293_s0] sm:$0xff]  ;;  %v27_v2 = vld [vmem:[%s2293_s0 + $0x8] sm:$0xff]  ;;  %s1518_s0 = smov [#allocation5]  }
  0x14   :  { %1463 = vset.pattern.permute.xlu0 %v1515_v0  ;;  %v1555_v3 = vld [vmem:[#allocation2 + $0x80] sm:$0xff]  ;;  %v66_v4 = vld [vmem:[#allocation2 + $0x88] sm:$0xff]  ;;  %v1564_v11 = vld [vmem:[#allocation2 + $0x90] sm:$0xff]  ;;  %s1008_s1 = sshll.u32 %s1518_s0, 4  ;;  %s1009_s1 = int_to_ptr.vmem [resolvable:$true] %s1008_s1 }
  0x15   :  { %32 = vperm.xlu0 %1463, %v26_v1   ;;  %v130_v5 = vand.u32 4294901760, %v1555_v3  ;;  %v1558_v6 = vld [vmem:[#allocation2] sm:$0xff]  ;;  %v1560_v7 = vld [vmem:[#allocation2 + $0x8] sm:$0xff]  ;;  %v133_v8 = vand.u32 4294901760, %v66_v4  ;;  %v1566_v12 = vld [vmem:[#allocation2 + $0x98] sm:$0xff]  ;;  %v136_v15 = vand.u32 4294901760, %v1564_v11  ;;  %p1491_p9 = scmp.lt.s32.totalorder %s1009_s1, %s1009_s1 }
  0x16   :  { %v82_v9 = vand.u32 4294901760, %v1558_v6  ;;  %v85_v10 = vand.u32 4294901760, %v1560_v7  ;;  %v1568_v13 = vld [vmem:[#allocation2 + $0x10] sm:$0xff]  ;;  %v139_v16 = vand.u32 4294901760, %v1566_v12  ;;  %v1575_v17 = vld [vmem:[#allocation2 + $0x18] sm:$0xff]  ;;  %v1627_v39 = vld [vmem:[#allocation2 + $0xa0] sm:$0xff] }
  0x17   :  { %v1571_v14 = vsub.f32 %v1555_v3, %v130_v5  ;;  %v88_v18 = vand.u32 4294901760, %v1568_v13  ;;  %v1578_v19 = vsub.f32 %v66_v4, %v133_v8  ;;  %v91_v22 = vand.u32 4294901760, %v1575_v17  ;;  %v1638_v44 = vld [vmem:[#allocation2 + $0xa8] sm:$0xff]  ;;  %v1643_v49 = vld [vmem:[#allocation2 + $0x20] sm:$0xff]  ;;  %v1649_v59 = vld [vmem:[#allocation2 + $0xb0] sm:$0xff]  ;;  %s1486_s27 = scalar_lea.vmem %s1009_s1, 256 }
  0x18   :  { %v1581_v20 = vsub.f32 %v1558_v6, %v82_v9  ;;  %v1584_v21 = vsub.f32 %v1560_v7, %v85_v10  ;;  %v1591_v24 = vsub.f32 %v1564_v11, %v136_v15  ;;  %v1596_v25 = vsub.f32 %v1566_v12, %v139_v16  ;;  %v1646_v54 = vld [vmem:[#allocation2 + $0x28] sm:$0xff]  ;;  %v1651_v60 = vld [vmem:[#allocation2 + $0xb8] sm:$0xff]  ;;  %v1661_v1 = vld [vmem:[#allocation2 + $0x30] sm:$0xff]  ;;  %p1487_p8 = scmp.ne.s32.totalorder %s1009_s1, %s1486_s27  ;;  %p1492_p10 = scmp.lt.s32.totalorder %s1486_s27, %s1486_s27 }
  0x19   :  { %35 = vperm.xlu0 %1463, %v27_v2   ;;  %v2316_v23 = vand.u32 4294901760, %v1571_v14  ;;  %v1601_v26 = vsub.f32 %v1568_v13, %v88_v18  ;;  %v2315_v27 = vand.u32 4294901760, %v1578_v19  ;;  %v1609_v30 = vsub.f32 %v1575_v17, %v91_v22 }
  0x1a   :  { %v2312_v28 = vand.u32 4294901760, %v1581_v20  ;;  %v2310_v29 = vand.u32 4294901760, %v1584_v21  ;;  %v2309_v32 = vand.u32 4294901760, %v1591_v24  ;;  %v2308_v33 = vand.u32 4294901760, %v1596_v25  ;;  %p1493_p11 = por %p1492_p10, %p1491_p9 }
  0x1b   :  { %v324_v31 = vsub.f32 %v1571_v14, %v2316_v23  ;;  %v2307_v34 = vand.u32 4294901760, %v1601_v26  ;;  %v331_v35 = vsub.f32 %v1578_v19, %v2315_v27  ;;  %v2301_v38 = vand.u32 4294901760, %v1609_v30  ;;  %v1874_v23 = vld [vmem:[#allocation2 + $0x60] sm:$0xff] }
  0x1c   :  { %v212_v36 = vsub.f32 %v1581_v20, %v2312_v28  ;;  %v219_v37 = vsub.f32 %v1584_v21, %v2310_v29  ;;  %v338_v41 = vsub.f32 %v1591_v24, %v2309_v32  ;;  %v345_v42 = vsub.f32 %v1596_v25, %v2308_v33  ;;  %p1494_p12 = pnand %p1493_p11, %p1487_p8 }
  0x1d   :  { %v325_v40 = vand.u32 4294901760, %v324_v31  ;;  %v226_v43 = vsub.f32 %v1601_v26, %v2307_v34  ;;  %v332_v45 = vand.u32 4294901760, %v331_v35  ;;  %v233_v48 = vsub.f32 %v1609_v30, %v2301_v38  ;;  %v1680_v35 = vld [vmem:[#allocation2 + $0x38] sm:$0xff] }
  0x1e   :  { %v213_v46 = vand.u32 4294901760, %v212_v36  ;;  %v220_v47 = vand.u32 4294901760, %v219_v37  ;;  %v339_v50 = vand.u32 4294901760, %v338_v41  ;;  %v346_v51 = vand.u32 4294901760, %v345_v42 }
  0x1f   :  { %v227_v52 = vand.u32 4294901760, %v226_v43  ;;  %v142_v53 = vand.u32 4294901760, %v1627_v39  ;;  %v1296_v55 = vpack.c.bf16 %v332_v45, %v325_v40  ;;  %v234_v57 = vand.u32 4294901760, %v233_v48 }
  0x20   :  { %v1298_v56 = vpack.c.bf16 %v220_v47, %v213_v46  ;;  %v145_v58 = vand.u32 4294901760, %v1638_v44  ;;  %v1300_v61 = vpack.c.bf16 %v346_v51, %v339_v50  ;;  %v1658_v63 = vpack.c.bf16 %v133_v8, %v130_v5 }
  0x21   :  { %v1656_v62 = vsub.f32 %v1627_v39, %v142_v53  ;;  %v94_v0 = vand.u32 4294901760, %v1643_v49  ;;  %1297 = vmatprep.subr.bf16.mxu1 %v1296_v55  ;;  %v1302_v2 = vpack.c.bf16 %v234_v57, %v227_v52  ;;  %v97_v4 = vand.u32 4294901760, %v1646_v54  ;;  %v1737_v57 = vld [vmem:[#allocation2 + $0xc8] sm:$0xff] }
  0x22   :  { %v1666_v3 = vsub.f32 %v1638_v44, %v145_v58  ;;  %v1669_v6 = vpack.c.bf16 %v85_v10, %v82_v9  ;;  %1299 = vmatpush3.bf16.msra.mxu1 %v1298_v56  ;;  %1265 = vmatprep.subr.bf16.mxu0 %v1658_v63  ;;  %v148_v8 = vand.u32 4294901760, %v1649_v59  ;;  %v151_v31 = vand.u32 4294901760, %v1651_v60  ;;  %v1735_v56 = vld [vmem:[#allocation2 + $0xc0] sm:$0xff] }
  0x23   :  { %v2299_v7 = vand.u32 4294901760, %v1656_v62  ;;  %v1676_v5 = vsub.f32 %v1643_v49, %v94_v0  ;;  %1301 = vmatprep.subr.bf16.mxu1 %v1300_v61  ;;  %v1686_v10 = vsub.f32 %v1646_v54, %v97_v4  ;;  %v1693_v36 = vpack.c.bf16 %v139_v16, %v136_v15  ;;  %v1805_v49 = vld [vmem:[#allocation2 + $0x58] sm:$0xff] }
  0x24   :  { %v2298_v9 = vand.u32 4294901760, %v1666_v3  ;;  %1267 = vmatpush3.bf16.msra.mxu0 %v1669_v6  ;;  %v100_v37 = vand.u32 4294901760, %v1661_v1  ;;  %v1703_v42 = vsub.f32 %v1649_v59, %v148_v8  ;;  %v1708_v11 = vsub.f32 %v1651_v60, %v151_v31 }
  0x25   :  { %v352_v40 = vsub.f32 %v1656_v62, %v2299_v7  ;;  %v2297_v41 = vand.u32 4294901760, %v1676_v5  ;;  %v2296_v15 = vand.u32 4294901760, %v1686_v10  ;;  %1269 = vmatprep.subr.bf16.mxu0 %v1693_v36  ;;  %v103_v16 = vand.u32 4294901760, %v1680_v35  ;;  %v1755_v7 = vld [vmem:[#allocation2 + $0x40] sm:$0xff] }
  0x26   :  { %v359_v12 = vsub.f32 %v1666_v3, %v2298_v9  ;;  %v1719_v43 = vsub.f32 %v1661_v1, %v100_v37  ;;  %1303 = vmatpush3.bf16.msra.mxu1 %v1302_v2  ;;  %v2300_v47 = vand.u32 4294901760, %v1703_v42  ;;  %v2303_v48 = vand.u32 4294901760, %v1708_v11 }
  0x27   :  { %v353_v45 = vand.u32 4294901760, %v352_v40  ;;  %v240_v46 = vsub.f32 %v1676_v5, %v2297_v41  ;;  %v247_v51 = vsub.f32 %v1686_v10, %v2296_v15  ;;  %v1733_v55 = vsub.f32 %v1680_v35, %v103_v16 }
  0x28   :  { %v360_v50 = vand.u32 4294901760, %v359_v12  ;;  %v2302_v52 = vand.u32 4294901760, %v1719_v43  ;;  %v366_v2 = vsub.f32 %v1703_v42, %v2300_v47  ;;  %v373_v40 = vsub.f32 %v1708_v11, %v2303_v48 }
  0x29   :  { %v241_v61 = vand.u32 4294901760, %v240_v46  ;;  %v1749_v12 = vpack.c.bf16 %v91_v22, %v88_v18  ;;  %v248_v41 = vand.u32 4294901760, %v247_v51  ;;  %v2304_v9 = vand.u32 4294901760, %v1733_v55  ;;  %v1760_v18 = vld [vmem:[#allocation2 + $0x48] sm:$0xff]  ;;  %v1762_v22 = vld [vmem:[#allocation2 + $0xd0] sm:$0xff] }
  0x2a   :  { %v1304_v15 = vpack.c.bf16 %v360_v50, %v353_v45  ;;  %v254_v46 = vsub.f32 %v1719_v43, %v2302_v52  ;;  %v367_v47 = vand.u32 4294901760, %v366_v2  ;;  %v374_v38 = vand.u32 4294901760, %v373_v40  ;;  %v1773_v40 = vld [vmem:[#allocation2 + $0xd8] sm:$0xff] }
  0x2b   :  { %1271 = vmatpush3.bf16.msra.mxu0 %v1749_v12  ;;  %v154_v13 = vand.u32 4294901760, %v1735_v56  ;;  %v157_v17 = vand.u32 4294901760, %v1737_v57  ;;  %v1306_v45 = vpack.c.bf16 %v248_v41, %v241_v61  ;;  %v261_v51 = vsub.f32 %v1733_v55, %v2304_v9 }
  0x2c   :  { %1305 = vmatprep.subr.bf16.mxu1 %v1304_v15  ;;  %v255_v50 = vand.u32 4294901760, %v254_v46  ;;  %v1771_v2 = vpack.c.bf16 %v145_v58, %v142_v53  ;;  %v1308_v52 = vpack.c.bf16 %v374_v38, %v367_v47  ;;  %v106_v15 = vand.u32 4294901760, %v1755_v7 }
  0x2d   :  { %v1778_v48 = vsub.f32 %v1735_v56, %v154_v13  ;;  %v1783_v41 = vsub.f32 %v1737_v57, %v157_v17  ;;  %1307 = vmatpush3.bf16.msra.mxu1 %v1306_v45  ;;  %v262_v39 = vand.u32 4294901760, %v261_v51  ;;  %v109_v44 = vand.u32 4294901760, %v1760_v18  ;;  %v1803_v45 = vld [vmem:[#allocation2 + $0x50] sm:$0xff] }
  0x2e   :  { %1273 = vmatprep.subr.bf16.mxu0 %v1771_v2  ;;  %v1792_v38 = vpack.c.bf16 %v97_v4, %v94_v0  ;;  %v2320_v53 = vand.u32 4294901760, %v1762_v22  ;;  %1309 = vmatprep.subr.bf16.mxu1 %v1308_v52  ;;  %v1800_v61 = vsub.f32 %v1755_v7, %v106_v15  ;;  %v2319_v46 = vand.u32 4294901760, %v1773_v40 }
  0x2f   :  { %v2305_v58 = vand.u32 4294901760, %v1778_v48  ;;  %v2306_v47 = vand.u32 4294901760, %v1783_v41  ;;  %v1310_v54 = vpack.c.bf16 %v262_v39, %v255_v50  ;;  %v1810_v0 = vsub.f32 %v1760_v18, %v109_v44 }
  0x30   :  { %1275 = vmatpush3.bf16.msra.mxu0 %v1792_v38  ;;  %v1816_v4 = vsub.f32 %v1762_v22, %v2320_v53  ;;  %v1822_v52 = vpack.c.bf16 %v151_v31, %v148_v8  ;;  %v2311_v39 = vand.u32 4294901760, %v1800_v61  ;;  %v1834_v9 = vsub.f32 %v1773_v40, %v2319_v46 }
  0x31   :  { %v380_v50 = vsub.f32 %v1778_v48, %v2305_v58  ;;  %v387_v51 = vsub.f32 %v1783_v41, %v2306_v47  ;;  %1311 = vmatpush3.bf16.msra.mxu1 %v1310_v54  ;;  %v2313_v59 = vand.u32 4294901760, %v1810_v0  ;;  %v2318_v8 = vand.u32 4294901760, %v1803_v45 }
  0x32   :  { %v2314_v60 = vand.u32 4294901760, %v1816_v4  ;;  %1277 = vmatprep.subr.bf16.mxu0 %v1822_v52  ;;  %v2317_v31 = vand.u32 4294901760, %v1805_v49  ;;  %v268_v34 = vsub.f32 %v1800_v61, %v2311_v39  ;;  %v2321_v33 = vand.u32 4294901760, %v1834_v9  ;;  %v1863_v39 = vld [vmem:[#allocation2 + $0xe8] sm:$0xff] }
  0x33   :  { %v381_v58 = vand.u32 4294901760, %v380_v50  ;;  %v388_v47 = vand.u32 4294901760, %v387_v51  ;;  %v275_v54 = vsub.f32 %v1810_v0, %v2313_v59  ;;  %v1854_v29 = vsub.f32 %v1803_v45, %v2318_v8  ;;  %v1861_v51 = vld [vmem:[#allocation2 + $0xe0] sm:$0xff] }
  0x34   :  { %v394_v32 = vsub.f32 %v1816_v4, %v2314_v60  ;;  %v1859_v50 = vsub.f32 %v1805_v49, %v2317_v31  ;;  %v269_v59 = vand.u32 4294901760, %v268_v34  ;;  %v401_v60 = vsub.f32 %v1834_v9, %v2321_v33 }
  0x35   :  { %v1312_v28 = vpack.c.bf16 %v388_v47, %v381_v58  ;;  %v1872_v27 = vpack.c.bf16 %v103_v16, %v100_v37  ;;  %v276_v31 = vand.u32 4294901760, %v275_v54  ;;  %v2324_v46 = vand.u32 4294901760, %v1854_v29  ;;  %v1878_v58 = vld [vmem:[#allocation2 + $0x68] sm:$0xff] }
  0x36   :  { %v395_v8 = vand.u32 4294901760, %v394_v32  ;;  %v2322_v53 = vand.u32 4294901760, %v1859_v50  ;;  %v402_v34 = vand.u32 4294901760, %v401_v60  ;;  %v166_v1 = vand.u32 4294901760, %v1861_v51  ;;  %v79_v60 = vld [vmem:[#allocation2 + $0xf0] sm:$0xff] }
  0x37   :  { %2344 = vst [vmem:[#allocation8_spill] sm:$0xff] %v1872_v27  ;;  %1313 = vmatprep.subr.bf16.mxu1 %v1312_v28  ;;  %1279 = vmatpush3.bf16.msra.mxu0 %v1872_v27  ;;  %v169_v35 = vand.u32 4294901760, %v1863_v39  ;;  %v1887_v37 = vpack.c.bf16 %v157_v17, %v154_v13  ;;  %v1314_v32 = vpack.c.bf16 %v276_v31, %v269_v59  ;;  %v118_v47 = vand.u32 4294901760, %v1874_v23  ;;  %v80_v13 = vld [vmem:[#allocation2 + $0xf8] sm:$0xff] }
  0x38   :  { %v282_v16 = vsub.f32 %v1854_v29, %v2324_v46  ;;  %v289_v28 = vsub.f32 %v1859_v50, %v2322_v53  ;;  %v1316_v54 = vpack.c.bf16 %v402_v34, %v395_v8  ;;  %v1897_v33 = vsub.f32 %v1861_v51, %v166_v1 }
  0x39   :  { %2345 = vst [vmem:[#allocation9_spill] sm:$0xff] %v1887_v37  ;;  %v1900_v56 = vsub.f32 %v1863_v39, %v169_v35  ;;  %1281 = vmatprep.subr.bf16.mxu0 %v1887_v37  ;;  %v121_v57 = vand.u32 4294901760, %v1878_v58  ;;  %1315 = vmatpush3.bf16.msra.mxu1 %v1314_v32  ;;  %v1905_v31 = vsub.f32 %v1874_v23, %v118_v47  ;;  %v172_v32 = vand.u32 4294901760, %v79_v60 }
  0x3a   :  { %v283_v17 = vand.u32 4294901760, %v282_v16  ;;  %v290_v59 = vand.u32 4294901760, %v289_v28  ;;  %v1911_v8 = vpack.c.bf16 %v109_v44, %v106_v15  ;;  %1317 = vmatprep.subr.bf16.mxu1 %v1316_v54  ;;  %v2323_v39 = vand.u32 4294901760, %v1897_v33  ;;  %v63_v16 = vld [vmem:[#allocation2 + $0x70] sm:$0xff]  ;;  %v64_v28 = vld [vmem:[#allocation2 + $0x78] sm:$0xff] }
  0x3b   :  { %v2325_v51 = vand.u32 4294901760, %v1900_v56  ;;  %v1916_v34 = vsub.f32 %v1878_v58, %v121_v57  ;;  %v2330_v23 = vand.u32 4294901760, %v1905_v31  ;;  %v175_v7 = vand.u32 4294901760, %v80_v13 }
  0x3c   :  { %2346 = vst [vmem:[#allocation10_spill] sm:$0xff] %v1911_v8  ;;  %v1318_v53 = vpack.c.bf16 %v290_v59, %v283_v17  ;;  %1283 = vmatpush3.bf16.msra.mxu0 %v1911_v8  ;;  %v2347_v18 = vand.u32 4294901760, %v1762_v22  ;;  %v2348_v15 = vand.u32 4294901760, %v1773_v40  ;;  %v408_v58 = vsub.f32 %v1897_v33, %v2323_v39 }
  0x3d   :  { %v415_v54 = vsub.f32 %v1900_v56, %v2325_v51  ;;  %v2335_v17 = vand.u32 4294901760, %v1916_v34  ;;  %v1933_v59 = vsub.f32 %v79_v60, %v172_v32  ;;  %v296_v22 = vsub.f32 %v1905_v31, %v2330_v23 }
  0x3e   :  { %v1924_v44 = vpack.c.bf16 %v2348_v15, %v2347_v18  ;;  %1319 = vmatpush3.bf16.msra.mxu1 %v1318_v53  ;;  %v1938_v40 = vsub.f32 %v80_v13, %v175_v7  ;;  %v124_v18 = vand.u32 4294901760, %v63_v16  ;;  %v127_v15 = vand.u32 4294901760, %v64_v28 }
  0x3f   :  { %v409_v39 = vand.u32 4294901760, %v408_v58  ;;  %v416_v46 = vand.u32 4294901760, %v415_v54  ;;  %v303_v51 = vsub.f32 %v1916_v34, %v2335_v17  ;;  %v2337_v60 = vand.u32 4294901760, %v1933_v59 }
  0x40   :  { %2349 = vst [vmem:[#allocation11_spill] sm:$0xff] %v1924_v44  ;;  %1285 = vmatprep.subr.bf16.mxu0 %v1924_v44  ;;  %v297_v8 = vand.u32 4294901760, %v296_v22  ;;  %v2336_v53 = vand.u32 4294901760, %v1938_v40  ;;  %v1946_v37 = vsub.f32 %v63_v16, %v124_v18  ;;  %v1948_v23 = vsub.f32 %v64_v28, %v127_v15 }
  0x41   :  { %v1320_v13 = vpack.c.bf16 %v416_v46, %v409_v39  ;;  %v304_v27 = vand.u32 4294901760, %v303_v51  ;;  %v422_v58 = vsub.f32 %v1933_v59, %v2337_v60  ;;  %v2350_v54 = vand.u32 4294901760, %v1803_v45 }
  0x42   :  { %v2351_v44 = vand.u32 4294901760, %v1805_v49  ;;  %v429_v22 = vsub.f32 %v1938_v40, %v2336_v53  ;;  %v309_v16 = vand.u32 4294901760, %v1946_v37  ;;  %v316_v28 = vand.u32 4294901760, %v1948_v23 }
  0x43   :  { %v1964_v46 = vpack.c.bf16 %v169_v35, %v166_v1  ;;  %1321 = vmatprep.subr.bf16.mxu1 %v1320_v13  ;;  %v1322_v39 = vpack.c.bf16 %v304_v27, %v297_v8  ;;  %v423_v51 = vand.u32 4294901760, %v422_v58  ;;  %v1967_v45 = vpack.c.bf16 %v121_v57, %v118_v47 }
  0x44   :  { %v1957_v17 = vpack.c.bf16 %v2351_v44, %v2350_v54  ;;  %v1969_v49 = vpack.c.bf16 %v175_v7, %v172_v32  ;;  %v430_v44 = vand.u32 4294901760, %v429_v22  ;;  %v310_v54 = vsub.f32 %v1946_v37, %v309_v16 }
  0x45   :  { %v317_v53 = vsub.f32 %v1948_v23, %v316_v28  ;;  %v1974_v60 = vpack.c.bf16 %v127_v15, %v124_v18  ;;  %1323 = vmatpush3.bf16.msra.mxu1 %v1322_v39  ;;  %v1328_v27 = vpack.c.bf16 %v1578_v19, %v1571_v14  ;;  %v2353_v39 = vand.u32 4294901760, %v1578_v19 }
  0x46   :  { %1287 = vmatpush3.bf16.msra.mxu0 %v1957_v17  ;;  %v1324_v57 = vpack.c.bf16 %v430_v44, %v423_v51  ;;  %v311_v8 = vand.u32 4294901760, %v310_v54  ;;  %v2354_v51 = vand.u32 4294901760, %v1581_v20  ;;  %v2355_v44 = vand.u32 4294901760, %v1584_v21 }
  0x47   :  { %1289 = vmatprep.subr.bf16.mxu0 %v1964_v46  ;;  %v318_v32 = vand.u32 4294901760, %v317_v53  ;;  %v2356_v54 = vand.u32 4294901760, %v1591_v24  ;;  %v2359_v19 = vand.u32 4294901760, %v1609_v30  ;;  %v2367_v13 = vand.u32 4294901760, %v1703_v42 }
  0x48   :  { %1325 = vmatprep.subr.bf16.mxu1 %v1324_v57  ;;  %v2020_v58 = vpack.c.bf16 %v2355_v44, %v2354_v51  ;;  %v2357_v57 = vand.u32 4294901760, %v1596_v25  ;;  %v2362_v51 = vand.u32 4294901760, %v1666_v3  ;;  %v2368_v15 = vand.u32 4294901760, %v1708_v11 }
  0x49   :  { %v1326_v22 = vpack.c.bf16 %v318_v32, %v311_v8  ;;  %v2352_v32 = vand.u32 4294901760, %v1571_v14  ;;  %v2358_v14 = vand.u32 4294901760, %v1601_v26  ;;  %v2364_v8 = vand.u32 4294901760, %v1676_v5 }
  0x4a   :  { %1291 = vmatpush3.bf16.msra.mxu0 %v1967_v45  ;;  %v2052_v18 = vpack.c.bf16 %v2368_v15, %v2367_v13  ;;  %v2379_v15 = vand.u32 4294901760, %v1816_v4  ;;  %v2380_v13 = vand.u32 4294901760, %v1834_v9 }
  0x4b   :  { %1293 = vmatprep.subr.bf16.mxu0 %v1969_v49  ;;  %1327 = vmatpush3.bf16.msra.mxu1 %v1326_v22  ;;  %v2014_v53 = vpack.c.bf16 %v2353_v39, %v2352_v32  ;;  %v2026_v22 = vpack.c.bf16 %v2357_v57, %v2356_v54  ;;  %v2034_v39 = vpack.c.bf16 %v2359_v19, %v2358_v14  ;;  %v2361_v32 = vand.u32 4294901760, %v1656_v62 }
  0x4c   :  { %1361 = vmatprep.subr.bf16.mxu1 %v1658_v63  ;;  %v2365_v54 = vand.u32 4294901760, %v1686_v10  ;;  %2369 = vst [vmem:[#allocation15_spill] sm:$0xff] %v2052_v18  ;;  %v2370_v14 = vand.u32 4294901760, %v1719_v43  ;;  %v2371_v19 = vand.u32 4294901760, %v1733_v55  ;;  %v2076_v35 = vpack.c.bf16 %v2380_v13, %v2379_v15 }
  0x4d   :  { %2360 = vst [vmem:[#allocation12_spill] sm:$0xff] %v2034_v39  ;;  %v2040_v44 = vpack.c.bf16 %v2362_v51, %v2361_v32  ;;  %v2373_v32 = vand.u32 4294901760, %v1778_v48  ;;  %v2374_v51 = vand.u32 4294901760, %v1783_v41  ;;  %v2391_v15 = vand.u32 4294901760, %v1933_v59 }
  0x4e   :  { %1295 = vmatpush3.bf16.msra.mxu0 %v1974_v60  ;;  %v2046_v57 = vpack.c.bf16 %v2365_v54, %v2364_v8  ;;  %v2058_v7 = vpack.c.bf16 %v2371_v19, %v2370_v14  ;;  %v2377_v8 = vand.u32 4294901760, %v1810_v0  ;;  %2381 = vst [vmem:[#allocation19_spill] sm:$0xff] %v2076_v35  ;;  %v2382_v14 = vand.u32 4294901760, %v1854_v29 }
  0x4f   :  { %2363 = vst [vmem:[#allocation13_spill] sm:$0xff] %v2040_v44  ;;  %1329 = vmatprep.subr.bf16.mxu0 %v1328_v27  ;;  %v2064_v47 = vpack.c.bf16 %v2374_v51, %v2373_v32  ;;  %v2376_v27 = vand.u32 4294901760, %v1800_v61  ;;  %v2383_v19 = vand.u32 4294901760, %v1859_v50  ;;  %v2385_v32 = vand.u32 4294901760, %v1897_v33 }
  0x50   :  { %2366 = vst [vmem:[#allocation14_spill] sm:$0xff] %v2046_v57  ;;  %2372 = vst [vmem:[#allocation16_spill] sm:$0xff] %v2058_v7  ;;  %v2386_v51 = vand.u32 4294901760, %v1900_v56  ;;  %v2392_v13 = vand.u32 4294901760, %v1938_v40 }
  0x51   :  { %2375 = vst [vmem:[#allocation17_spill] sm:$0xff] %v2064_v47  ;;  %v2070_v54 = vpack.c.bf16 %v2377_v8, %v2376_v27  ;;  %v2082_v1 = vpack.c.bf16 %v2383_v19, %v2382_v14  ;;  %v2388_v27 = vand.u32 4294901760, %v1905_v31  ;;  %v2389_v8 = vand.u32 4294901760, %v1916_v34 }
  0x52   :  { %v2088_v47 = vpack.c.bf16 %v2386_v51, %v2385_v32  ;;  %v2100_v35 = vpack.c.bf16 %v2392_v13, %v2391_v15  ;;  %v2102_v14 = vpack.c.bf16 %v316_v28, %v309_v16  ;;  %v28_v19 = vlaneseq }
  0x53   :  { %2378 = vst [vmem:[#allocation18_spill] sm:$0xff] %v2070_v54  ;;  %2384 = vst [vmem:[#allocation20_spill] sm:$0xff] %v2082_v1  ;;  %v2094_v54 = vpack.c.bf16 %v2389_v8, %v2388_v27  ;;  %v1516_v27 = vmov 0.0   ;;  %v2338_v8 = vmov 1.0  }
  0x54   :  { %2387 = vst [vmem:[#allocation21_spill] sm:$0xff] %v2088_v47  ;;  %2393 = vst [vmem:[#allocation23_spill] sm:$0xff] %v2100_v35  ;;  %v2104_v1 = vand.u32 127, %v28_v19  ;;  %v2397_v35 = vmov 1.0  }
  0x55   :  { %2390 = vst [vmem:[#allocation22_spill] sm:$0xff] %v2094_v54  ;;  %2394 = vst [vmem:[#allocation24_spill] sm:$0xff] %v2102_v14 }
  0x56   :  { %2395 = vst [vmem:[#allocation25_spill] sm:$0xff] %v2104_v1  ;;  %v2107_v32 = vadd.s32 128, %v2104_v1 }
  0x94   :  { %v2109_v51 = vpop.permute.xlu0 %32 }
  0x95   :  { %vm37_vm0 = vcmp.eq.s32.totalorder %v2104_v1, %v2109_v51  ;;  %vm38_vm1 = vcmp.eq.s32.totalorder %v2107_v32, %v2109_v51 }
  0x96   :  { %v1020_v16 = vsel %vm37_vm0, 1.0, %v1516_v27  ;;  %v1021_v28 = vsel %vm38_vm1, 1.0, %v1516_v27  ;;  %1024 = vmatprep.mubr.msk.f32.mxu1 %vm38_vm1, %v2338_v8 }
  0x97   :  { %v178_v15 = vsub.f32 %v1021_v28, %v1021_v28  ;;  %v2125_v13 = vsub.f32 %v1020_v16, %v1020_v16  ;;  %1025 = vmatmul.mubr.msk.f32.vlgmr.msra.gmra.mrb[0].mxu1 %vm37_vm0, %v2338_v8 }
  0x98   :  { %1363 = vmatpush3.bf16.msra.mxu1 %v1669_v6  ;;  %v2132_v19 = vpop.permute.xlu0 %35 }
  0x99   :  { %2396 = vst [vmem:[#allocation26_spill] sm:$0xff] %v2132_v19  ;;  %vm39_vm2 = vcmp.eq.s32.totalorder %v2104_v1, %v2132_v19  ;;  %vm40_vm3 = vcmp.eq.s32.totalorder %v2107_v32, %v2132_v19  ;;  %1365 = vmatprep.subr.bf16.mxu1 %v1693_v36  ;;  %v179_v28 = vand.u32 4294901760, %v178_v15  ;;  %v185_v16 = vand.u32 4294901760, %v2125_v13 }
  0x9a   :  { %v1022_v14 = vsel %vm39_vm2, 1.0, %v1516_v27  ;;  %v1023_v8 = vsel %vm40_vm3, 1.0, %v1516_v27  ;;  %1026 = vmatprep.mubr.msk.f32.mxu1 %vm40_vm3, %v2397_v35  ;;  %v2398_v19 = vpack.c.bf16 %v1584_v21, %v1581_v20  ;;  %v2403_v20 = vpack.c.bf16 %v1666_v3, %v1656_v62  ;;  %v2404_v21 = vld [vmem:[#allocation10_spill] sm:$0xff] }
  0x9b   :  { %v193_v54 = vsub.f32 %v1023_v8, %v1023_v8  ;;  %v199_v47 = vsub.f32 %v1022_v14, %v1022_v14  ;;  %1027 = vmatmul.mubr.msk.f32.gmra.mrb[2].mxu1 %vm39_vm2, %v2397_v35  ;;  %v180_v7 = vsub.f32 %v178_v15, %v179_v28  ;;  %v186_v18 = vsub.f32 %v2125_v13, %v185_v16 }
  0x9c   :  { %1367 = vmatpush3.bf16.msra.mxu1 %v1749_v12  ;;  %693 = vmatprep.mubr.f32.mxu1 %v179_v28  ;;  %v2410_v62 = vpack.c.bf16 %v1810_v0, %v1800_v61  ;;  %v2411_v3 = vpack.c.bf16 %v1834_v9, %v1816_v4  ;;  %v2414_v9 = vpack.c.bf16 %v1916_v34, %v1905_v31  ;;  %v2429_v61 = vld [vmem:[#allocation22_spill] sm:$0xff]  ;;  %v2430_v0 = vld [vmem:[#allocation23_spill] sm:$0xff]  ;;  %v2431_v4 = vld [vmem:[#allocation24_spill] sm:$0xff] }
  0x9d   :  { %1369 = vmatprep.subr.bf16.mxu1 %v1771_v2  ;;  %v181_v27 = vand.u32 4294901760, %v180_v7  ;;  %v187_v57 = vand.u32 4294901760, %v186_v18  ;;  %v194_v44 = vand.u32 4294901760, %v193_v54  ;;  %v200_v39 = vand.u32 4294901760, %v199_v47  ;;  %v2400_v18 = vld [vmem:[#allocation8_spill] sm:$0xff] }
  0x9e   :  { %v2399_v7 = vpack.c.bf16 %v1596_v25, %v1591_v24  ;;  %v2405_v24 = vpack.c.bf16 %v1686_v10, %v1676_v5  ;;  %v2406_v25 = vld [vmem:[#allocation11_spill] sm:$0xff]  ;;  %v2412_v5 = vpack.c.bf16 %v1859_v50, %v1854_v29  ;;  %v2413_v10 = vpack.c.bf16 %v1900_v56, %v1897_v33 }
  0x9f   :  { %182 = vmatprep.mubr.f32.mxu0 %v181_v27  ;;  %v195_v8 = vsub.f32 %v193_v54, %v194_v44  ;;  %v201_v14 = vsub.f32 %v199_v47, %v200_v39  ;;  %v2401_v27 = vpack.c.bf16 %v1609_v30, %v1601_v26  ;;  %v2408_v26 = vpack.c.bf16 %v1733_v55, %v1719_v43  ;;  %v2422_v43 = vld [vmem:[#allocation17_spill] sm:$0xff]  ;;  %v2424_v55 = vld [vmem:[#allocation19_spill] sm:$0xff] }
  0xa0   :  { %1371 = vmatpush3.bf16.msra.mxu1 %v1792_v38  ;;  %188 = vmatmul.mubr.f32.vlgmr.msra.gmra.mrb[0].mxu0 %v187_v57  ;;  %v2402_v57 = vld [vmem:[#allocation9_spill] sm:$0xff]  ;;  %v2409_v30 = vpack.c.bf16 %v1783_v41, %v1778_v48  ;;  %v2415_v29 = vpack.c.bf16 %v1938_v40, %v1933_v59  ;;  %v2416_v33 = vpack.c.bf16 %v1948_v23, %v1946_v37  ;;  %v2423_v48 = vld [vmem:[#allocation18_spill] sm:$0xff] }
  0xa1   :  { %1331 = vmatpush3.bf16.msra.mxu0 %v2398_v19  ;;  %1373 = vmatprep.subr.bf16.mxu1 %v1822_v52  ;;  %v196_v1 = vand.u32 4294901760, %v195_v8  ;;  %v202_v28 = vand.u32 4294901760, %v201_v14 }
  0xa2   :  { %1333 = vmatprep.subr.bf16.mxu0 %v2399_v7 }
  0xa3   :  { %197 = vmatprep.mubr.f32.mxu0 %v196_v1  ;;  %v2407_v1 = vpack.c.bf16 %v1708_v11, %v1703_v42  ;;  %v2420_v42 = vld [vmem:[#allocation15_spill] sm:$0xff]  ;;  %v2421_v11 = vld [vmem:[#allocation16_spill] sm:$0xff] }
  0xa4   :  { %1375 = vmatpush3.bf16.msra.mxu1 %v2400_v18  ;;  %203 = vmatmul.mubr.f32.gmra.mrb[2].mxu0 %v202_v28 }
  0xa5   :  { %1335 = vmatpush3.bf16.msra.mxu0 %v2401_v27  ;;  %577 = vmatprep.mubr.f32.mxu0 %v178_v15 }
  0xa6   :  { %1377 = vmatprep.subr.bf16.mxu1 %v2402_v57  ;;  %1337 = vmatprep.subr.bf16.mxu0 %v2403_v20 }
  0xa8   :  { %1379 = vmatpush3.bf16.msra.mxu1 %v2404_v21 }
  0xa9   :  { %1339 = vmatpush3.bf16.msra.mxu0 %v2405_v24  ;;  %1381 = vmatprep.subr.bf16.mxu1 %v2406_v25 }
  0xaa   :  { %1341 = vmatprep.subr.bf16.mxu0 %v2407_v1 }
  0xac   :  { %1383 = vmatpush3.bf16.msra.mxu1 %v1957_v17 }
  0xad   :  { %1343 = vmatpush3.bf16.msra.mxu0 %v2408_v26  ;;  %1385 = vmatprep.subr.bf16.mxu1 %v1964_v46 }
  0xae   :  { %1345 = vmatprep.subr.bf16.mxu0 %v2409_v30 }
  0xb0   :  { %1387 = vmatpush3.bf16.msra.mxu1 %v1967_v45 }
  0xb1   :  { %1347 = vmatpush3.bf16.msra.mxu0 %v2410_v62  ;;  %1389 = vmatprep.subr.bf16.mxu1 %v1969_v49 }
  0xb2   :  { %1349 = vmatprep.subr.bf16.mxu0 %v2411_v3 }
  0xb4   :  { %1391 = vmatpush3.bf16.msra.mxu1 %v1974_v60 }
  0xb5   :  { %1351 = vmatpush3.bf16.msra.mxu0 %v2412_v5  ;;  %1425 = vmatprep.subr.bf16.mxu1 %v1658_v63  ;;  %v2417_v63 = vld [vmem:[#allocation12_spill] sm:$0xff] }
  0xb6   :  { %1353 = vmatprep.subr.bf16.mxu0 %v2413_v10 }
  0xb7   :  { %697 = vmatmul.mubr.f32.vlgmr.msra.gmra.mrb[4].mxu1 %v185_v16 }
  0xb8   :  { %704 = vmatprep.mubr.f32.mxu1 %v194_v44  ;;  %1427 = vmatpush3.bf16.msra.mxu1 %v1669_v6  ;;  %v2418_v6 = vld [vmem:[#allocation13_spill] sm:$0xff] }
  0xb9   :  { %1355 = vmatpush3.bf16.msra.mxu0 %v2414_v9  ;;  %1429 = vmatprep.subr.bf16.mxu1 %v1693_v36  ;;  %v2419_v36 = vld [vmem:[#allocation14_spill] sm:$0xff] }
  0xba   :  { %1357 = vmatprep.subr.bf16.mxu0 %v2415_v29 }
  0xbb   :  { %708 = vmatmul.mubr.f32.gmra.mrb[6].mxu1 %v200_v39 }
  0xbc   :  { %1431 = vmatpush3.bf16.msra.mxu1 %v1749_v12  ;;  %1032 = vmatprep.mubr.msk.f32.mxu1 %vm38_vm1, %v2397_v35  ;;  %v2425_v12 = vld [vmem:[#allocation20_spill] sm:$0xff] }
  0xbd   :  { %1359 = vmatpush3.bf16.msra.mxu0 %v2416_v33  ;;  %1433 = vmatprep.subr.bf16.mxu1 %v1771_v2  ;;  %v2426_v2 = vld [vmem:[#allocation21_spill] sm:$0xff] }
  0xbe   :  { %1393 = vmatprep.subr.bf16.mxu0 %v2014_v53 }
  0xc0   :  { %580 = vmatmul.mubr.f32.vlgmr.msra.gmra.mrb[4].mxu0 %v2125_v13  ;;  %1435 = vmatpush3.bf16.msra.mxu1 %v1792_v38 }
  0xc1   :  { %586 = vmatprep.mubr.f32.mxu0 %v193_v54  ;;  %1395 = vmatpush3.bf16.msra.mxu0 %v2020_v58 }
  0xc2   :  { %1437 = vmatprep.subr.bf16.mxu1 %v1822_v52  ;;  %1397 = vmatprep.subr.bf16.mxu0 %v2026_v22 }
  0xc4   :  { %589 = vmatmul.mubr.f32.gmra.mrb[6].mxu0 %v199_v47  ;;  %1439 = vmatpush3.bf16.msra.mxu1 %v2400_v18 }
  0xc5   :  { %1399 = vmatpush3.bf16.msra.mxu0 %v2417_v63  ;;  %1028 = vmatprep.mubr.msk.f32.mxu0 %vm38_vm1, %v2397_v35 }
  0xc6   :  { %1441 = vmatprep.subr.bf16.mxu1 %v2402_v57  ;;  %1401 = vmatprep.subr.bf16.mxu0 %v2418_v6 }
  0xc8   :  { %1443 = vmatpush3.bf16.msra.mxu1 %v2404_v21 }
  0xc9   :  { %1403 = vmatpush3.bf16.msra.mxu0 %v2419_v36  ;;  %1445 = vmatprep.subr.bf16.mxu1 %v2406_v25 }
  0xca   :  { %1405 = vmatprep.subr.bf16.mxu0 %v2420_v42 }
  0xcc   :  { %1447 = vmatpush3.bf16.msra.mxu1 %v1957_v17 }
  0xcd   :  { %1407 = vmatpush3.bf16.msra.mxu0 %v2421_v11  ;;  %1449 = vmatprep.subr.bf16.mxu1 %v1964_v46 }
  0xce   :  { %1409 = vmatprep.subr.bf16.mxu0 %v2422_v43 }
  0xd0   :  { %1451 = vmatpush3.bf16.msra.mxu1 %v1967_v45 }
  0xd1   :  { %1411 = vmatpush3.bf16.msra.mxu0 %v2423_v48  ;;  %1453 = vmatprep.subr.bf16.mxu1 %v1969_v49 }
  0xd2   :  { %1413 = vmatprep.subr.bf16.mxu0 %v2424_v55 }
  0xd4   :  { %1455 = vmatpush3.bf16.msra.mxu1 %v1974_v60 }
  0xd5   :  { %1415 = vmatpush3.bf16.msra.mxu0 %v2425_v12 }
  0xd6   :  { %1417 = vmatprep.subr.bf16.mxu0 %v2426_v2 }
  0xd7   :  { %1033 = vmatmul.mubr.msk.f32.vlgmr.msra.gmra.mrb[8].mxu1 %vm37_vm0, %v2397_v35 }
  0xd8   :  { %1034 = vmatprep.mubr.msk.f32.mxu1 %vm40_vm3, %v2397_v35 }
  0xd9   :  { %1419 = vmatpush3.bf16.msra.mxu0 %v2429_v61 }
  0xda   :  { %1421 = vmatprep.subr.bf16.mxu0 %v2430_v0 }
  0xdb   :  { %1035 = vmatmul.mubr.msk.f32.gmra.mrb[10].mxu1 %vm39_vm2, %v2397_v35 }
  0xdd   :  { %1423 = vmatpush3.bf16.msra.mxu0 %v2431_v4 }
  0xe0   :  { %1029 = vmatmul.mubr.msk.f32.vlgmr.msra.gmra.mrb[8].mxu0 %vm37_vm0, %v2397_v35 }
  0xe1   :  { %1030 = vmatprep.mubr.msk.f32.mxu0 %vm40_vm3, %v2397_v35 }
  0xe4   :  { %1031 = vmatmul.mubr.msk.f32.gmra.mrb[10].mxu0 %vm39_vm2, %v2397_v35 }
 0x16a   :  { %v1106_v52 = vpop.f32.mrb[0].mxu1 }
 0x16b   :  { %v1107_v50 = vpop.f32.mrb[1].mxu1 }
 0x16c   :  { %v1108_v37 = vadd.f32 %v1107_v50, %v1106_v52 }
 0x16e   :  { %v1109_v56 = vpop.f32.mrb[2].mxu1 }
 0x16f   :  { %v1110_v31 = vpop.f32.mrb[3].mxu1 }
 0x170   :  { %v1111_v34 = vadd.f32 %v1110_v31, %v1109_v56 }
 0x173   :  { %v1068_v23 = vpop.f32.mrb[0].mxu0 }
 0x174   :  { %v1069_v17 = vpop.f32.mrb[1].mxu0 }
 0x175   :  { %v1070_v59 = vadd.f32 %v1069_v17, %v1068_v23 }
 0x177   :  { %v437_v40 = vadd.f32 %v1108_v37, %v1070_v59  ;;  %v1071_v60 = vpop.f32.mrb[2].mxu0 }
 0x178   :  { %v1072_v46 = vpop.f32.mrb[3].mxu0 }
 0x179   :  { %v1073_v45 = vadd.f32 %v1072_v46, %v1071_v60 }
 0x17b   :  { %v444_v49 = vadd.f32 %v1111_v34, %v1073_v45 }
 0x18a   :  { %v1182_v47 = vpop.f32.mrb[4].mxu1 }
 0x18b   :  { %v1183_v58 = vpop.f32.mrb[5].mxu1 }
 0x18c   :  { %v1184_v53 = vadd.f32 %v1183_v58, %v1182_v47 }
 0x18e   :  { %v1185_v22 = vpop.f32.mrb[6].mxu1 }
 0x18f   :  { %v1186_v39 = vpop.f32.mrb[7].mxu1 }
 0x190   :  { %v1187_v35 = vadd.f32 %v1186_v39, %v1185_v22 }
 0x193   :  { %v1144_v44 = vpop.f32.mrb[4].mxu0 }
 0x194   :  { %v1145_v54 = vpop.f32.mrb[5].mxu0 }
 0x195   :  { %v1146_v32 = vadd.f32 %v1145_v54, %v1144_v44 }
 0x197   :  { %v582_v51 = vadd.f32 %v1146_v32, %v437_v40  ;;  %v1147_v15 = vpop.f32.mrb[6].mxu0 }
 0x198   :  { %v1148_v13 = vpop.f32.mrb[7].mxu0 }
 0x199   :  { %v1149_v19 = vadd.f32 %v1148_v13, %v1147_v15  ;;  %v699_v16 = vadd.f32 %v1184_v53, %v582_v51 }
 0x19b   :  { %v591_v8 = vadd.f32 %v1149_v19, %v444_v49 }
 0x19d   :  { %v710_v14 = vadd.f32 %v1187_v35, %v591_v8 }
 0x1aa   :  { %v1258_v28 = vpop.f32.mrb[8].mxu1 }
 0x1ab   :  { %v1259_v7 = vpop.f32.mrb[9].mxu1 }
 0x1ac   :  { %v1260_v18 = vadd.f32 %v1259_v7, %v1258_v28 }
 0x1ae   :  { %v1261_v27 = vpop.f32.mrb[10].mxu1 }
 0x1af   :  { %v1262_v57 = vpop.f32.mrb[11].mxu1 }
 0x1b0   :  { %v1263_v20 = vadd.f32 %v1262_v57, %v1261_v27 }
 0x1b3   :  { %v1220_v21 = vpop.f32.mrb[8].mxu0 }
 0x1b4   :  { %v1221_v24 = vpop.f32.mrb[9].mxu0 }
 0x1b5   :  { %v1222_v25 = vadd.f32 %v1221_v24, %v1220_v21 }
 0x1b7   :  { %v878_v1 = vadd.f32 %v1222_v25, %v699_v16  ;;  %v1223_v26 = vpop.f32.mrb[10].mxu0 }
 0x1b8   :  { %v1224_v30 = vpop.f32.mrb[11].mxu0 }
 0x1b9   :  { %v989_v62 = vadd.f32 %v1260_v18, %v878_v1  ;;  %v1225_v3 = vadd.f32 %v1224_v30, %v1223_v26 }
 0x1bb   :  { %v999_v5 = vmul.f32 11.313708, %v989_v62  ;;  %v885_v10 = vadd.f32 %v1225_v3, %v710_v14 }
 0x1bd   :  { %1001 = vst [vmem:[#allocation5] sm:$0xff] %v999_v5  ;;  %v996_v9 = vadd.f32 %v1263_v20, %v885_v10 }
 0x1bf   :  { %v1000_v29 = vmul.f32 11.313708, %v996_v9 }
 0x1c1   :  { %1002 = vst [vmem:[#allocation5 + $0x8] sm:$0xff] %v1000_v29 }
 0x1c2   :  { %1497 = shalt.err (!%p1494_p12)
}
 0x1c3   :  { %s1498_s30 = scalar_lea.hbm %s2295_s2, 256 }
 0x1c4   :  { %p1499_p13 = scmp.ne.s32.totalorder %s2295_s2, %s1498_s30  ;;  %p1502_p0 = scmp.lt.u32.totalorder %s1498_s30, %s2295_s2 }
 0x1c6   :  { %p1504_p1 = pnand %p1502_p0, %p1499_p13 }
 0x1c8   :  { %1507 = shalt.err (!%p1504_p1)
}
 0x1c9   :  { %1014 = dma.vmem_to_hbm [thread:$0]  %s1009_s1, 256, %s2295_s2, [#allocation4], %s1513_s19, %s1513_s19, %s1514_s20  }
 0x1ca   :  { %1510 = dma.done.wait [#allocation4], 256  }
 0x1cb   :  { %1511 = vsyncadd [#allocation4], 4294967040 }
 0x1cc   :  { %1018 = vsyncpa [#allocation3], 1 }
 0x1cd   :  { %1019 = vsyncpa [#allocation4], 1 }

</bundles_post_ra>
